<compile_context>
chip_gen: v6e
topology: v6e:2x2x1
jax: 0.10.0
libtpu: 0.0.40
codegen_flags: <defaults>
</compile_context>

<pallas_src>
import functools
import math

import jax
import jax.numpy as jnp
from jax import lax
from jax.experimental import pallas as pl
from jax.experimental.pallas import tpu as pltpu


# ---------------------------------------------------------------------------
# Fused MEE forward kernel
# ---------------------------------------------------------------------------
def _l2norm(y):
    # F.normalize(y, dim=1): y / max(||y||_2, 1e-12) == y * rsqrt(max(sumsq, 1e-24))
    # rsqrt goes to the (otherwise idle) EUP slot; the per-row divide is a mul.
    ss = jnp.sum(y * y, axis=-1, keepdims=True)
    return y * lax.rsqrt(jnp.maximum(ss, 1e-24))


def _mee_fused_kernel(in_pads, ind_ref, text_x_ref, text_w_ref,
                      x_all_ref, w_all_ref, bias_ref, o_ref):
    """Fully fused MEE forward.

    in_pads   : static tuple of per-modality padded in_dims (offsets into the
                packed x_all / w_all arrays; all multiples of 128).
    ind_ref   : (bs, M)   f32 modality-availability mask
    text_x_ref: (T, Dt)   bf16 text inputs
    text_w_ref: (Dt, D)   bf16 text Linear weight
    x_all_ref : (bs, sum_pad) bf16 packed modality inputs (zero padded)
    w_all_ref : (sum_pad, D)  bf16 packed modality Linear weights (zero padded)
    bias_ref  : (M+1, D)  f32 biases; row 0 = text, rows 1..M = modalities
    o_ref     : (T, bs)   f32 similarity matrix
    """
    f32 = jnp.float32
    bs = x_all_ref.shape[0]
    D = w_all_ref.shape[1]

    # Text GU (gating=False): Linear (bf16 MXU, f32 accumulate) + L2 norm (f32).
    text_embd = _l2norm(
        jnp.dot(text_x_ref[...], text_w_ref[...], preferred_element_type=f32)
        + bias_ref[0:1, :])                               # (T, D)

    # MoE weights: moe_w[b, m] = ind[b, m] / sum_m ind[b, m]
    # (the 1/M factor of the torch code cancels in the normalization).
    # NOTE: a batch element with no available modality gives denom == 0 and a
    # NaN column -- identical to the PyTorch module's behavior.
    ind = ind_ref[...]                                    # (bs, M)
    denom = jnp.sum(ind, axis=1, keepdims=True)           # (bs, 1)
    moe_w = ind * pl.reciprocal(denom, approx=True)       # EUP; hoisted out of loop

    # Modality GUs, reassociated: acc_y[b,:] = sum_m moe_w[b,m] * y_m[b,:]
    acc_y = jnp.zeros((bs, D), f32)
    off = 0
    for m, pad_in in enumerate(in_pads):                  # static unroll, M is tiny
        y = _l2norm(
            jnp.dot(x_all_ref[:, off:off + pad_in],       # lane-aligned static slice
                    w_all_ref[off:off + pad_in, :],       # sublane-aligned static slice
                    preferred_element_type=f32)
            + bias_ref[m + 1:m + 2, :])                   # (bs, D)
        acc_y = acc_y + moe_w[:, m:m + 1] * y             # (bs,1) sublane broadcast
        off += pad_in

    # Single similarity contraction on the MXU: <text_embd[t,:], acc_y[b,:]>.
    o_ref[...] = lax.dot_general(
        text_embd.astype(jnp.bfloat16), acc_y.astype(jnp.bfloat16),
        dimension_numbers=(((1,), (1,)), ((), ())),
        preferred_element_type=f32)                       # (T, bs), single store


# ---------------------------------------------------------------------------
# Net / MEE forward wrapper: one pallas_call, everything resident in VMEM.
# ---------------------------------------------------------------------------
def net_forward(params, mod, ind, text_uniq, mod_keys):
    M = len(mod_keys)
    T, text_dim = text_uniq.shape
    bs = mod[mod_keys[0]].shape[0]
    D = params["text"][0].shape[1]

    def _pad128(n):
        return ((n + 127) // 128) * 128

    in_dims = [mod[k].shape[1] for k in mod_keys]
    in_pads = tuple(_pad128(d) for d in in_dims)
    sum_pad = sum(in_pads)

    # Pack modality inputs / weights / biases into a handful of operands so the
    # kernel prologue is a few DMAs instead of 3M+ micro-DMAs.  Zero padding of
    # both x and w means the padded rows/cols contribute nothing to the matmul.
    x_all = jnp.zeros((bs, sum_pad), jnp.bfloat16)
    w_all = jnp.zeros((sum_pad, D), jnp.bfloat16)
    bias_all = jnp.zeros((M + 1, D), jnp.float32).at[0].set(params["text"][1])
    off = 0
    for m, k in enumerate(mod_keys):
        w, b = params["mod"][k]
        d = in_dims[m]
        x_all = x_all.at[:, off:off + d].set(mod[k].astype(jnp.bfloat16))
        w_all = w_all.at[off:off + d, :].set(w.astype(jnp.bfloat16))
        bias_all = bias_all.at[m + 1].set(b)
        off += in_pads[m]

    # Availability mask as (bs, M): per-modality weight slices are (bs, 1)
    # columns that broadcast over the lane (D) dim with no in-kernel relayout.
    ind_mat = jnp.stack([ind[k] for k in mod_keys], axis=1).astype(jnp.float32)

    text_x = text_uniq.astype(jnp.bfloat16)
    text_w = params["text"][0].astype(jnp.bfloat16)

    inputs = [ind_mat, text_x, text_w, x_all, w_all, bias_all]

    flops = 2 * (T * text_dim * D
                 + sum(bs * p * D for p in in_pads)
                 + T * bs * D)
    transcendentals = T + M * bs + bs                    # rsqrts + reciprocal
    bytes_accessed = sum(int(a.size) * a.dtype.itemsize for a in inputs) + T * bs * 4

    kernel = functools.partial(_mee_fused_kernel, in_pads)
    return pl.pallas_call(
        kernel,
        out_shape=jax.ShapeDtypeStruct((T, bs), jnp.float32),
        # No grid: the problem is launch/DMA-bound and everything fits in VMEM.
        in_specs=[pl.BlockSpec(memory_space=pltpu.MemorySpace.VMEM)
                  for _ in inputs],
        out_specs=pl.BlockSpec(memory_space=pltpu.MemorySpace.VMEM),
        cost_estimate=pl.CostEstimate(flops=flops,
                                      transcendentals=transcendentals,
                                      bytes_accessed=bytes_accessed),
    )(*inputs)
    # TODO(synk): if T/bs/latent_dim ever scale up, add a (tile_T, tile_bs) grid
    # sized against v7x's 64 MiB VMEM (32 MiB scoped default), mark the T axis
    # "parallel" for megacore, and orient the output so the larger of T/bs is
    # the lane-dense last dim (multiple of 128) to avoid masked vst stores.


# ---------------------------------------------------------------------------
# Deterministic parameter init (PyTorch nn.Linear default: U(-1/sqrt(in), +))
# ---------------------------------------------------------------------------
def _init_linear(key, in_dim, out_dim):
    kw, kb = jax.random.split(key)
    bound = 1.0 / math.sqrt(in_dim)
    w = jax.random.uniform(kw, (in_dim, out_dim), jnp.float32, -bound, bound)
    b = jax.random.uniform(kb, (out_dim,), jnp.float32, -bound, bound)
    return w, b


if __name__ == "__main__":
    key = jax.random.PRNGKey(0)

    mod_dim = {"video": 64, "audio": 32}
    text_dim = 96
    latent_dim = 128
    bs = 8
    num_text = 16
    mod_keys = list(mod_dim.keys())

    # Parameters
    keys = jax.random.split(key, 2 + len(mod_keys))
    params = {
        "mod": {k: _init_linear(keys[i], mod_dim[k], latent_dim)
                for i, k in enumerate(mod_keys)},
        "text": _init_linear(keys[-2], text_dim, latent_dim),
    }

    # Inputs
    dkeys = jax.random.split(keys[-1], len(mod_keys) + 1)
    mod = {k: jax.random.normal(dkeys[i], (bs, mod_dim[k]), jnp.float32)
           for i, k in enumerate(mod_keys)}
    text_uniq = jax.random.normal(dkeys[-1], (num_text, text_dim), jnp.float32)
    # availability indicators: "video" always present, "audio" present for even rows
    ind = {
        "video": jnp.ones((bs,), jnp.float32),
        "audio": (jnp.arange(bs) % 2 == 0).astype(jnp.float32),
    }

    fwd = functools.partial(net_forward, mod_keys=mod_keys)
    sim_matrix = fwd(params, mod, ind, text_uniq)
    jax.block_until_ready(sim_matrix)

    assert sim_matrix.shape == (num_text, bs)
    assert jnp.all(jnp.isfinite(sim_matrix))
    print("KERNEL_OK")
</pallas_src>

<mosaic_0001>
module attributes {stable_mosaic.version = 11 : i64} {
  func.func @_mee_fused_kernel(%arg0: memref<8x2xf32, #tpu.memory_space<vmem>>, %arg1: memref<16x96xbf16, #tpu.memory_space<vmem>>, %arg2: memref<96x128xbf16, #tpu.memory_space<vmem>>, %arg3: memref<8x256xbf16, #tpu.memory_space<vmem>>, %arg4: memref<256x128xbf16, #tpu.memory_space<vmem>>, %arg5: memref<3x128xf32, #tpu.memory_space<vmem>>, %arg6: memref<16x8xf32, #tpu.memory_space<vmem>>) attributes {dimension_semantics = [], scalar_prefetch = 0 : i64, scratch_operands = 0 : i64, tpu.core_type = #tpu.core_type<tc>} {
    %c0 = arith.constant 0 : index
    %c0_0 = arith.constant 0 : index
    %0 = vector.load %arg1[%c0, %c0_0] : memref<16x96xbf16, #tpu.memory_space<vmem>>, vector<16x96xbf16>
    %c0_1 = arith.constant 0 : index
    %c0_2 = arith.constant 0 : index
    %1 = vector.load %arg2[%c0_1, %c0_2] : memref<96x128xbf16, #tpu.memory_space<vmem>>, vector<96x128xbf16>
    %cst = arith.constant dense<0.000000e+00> : vector<16x128xf32>
    %2 = tpu.matmul %0, %1, %cst {dimension_numbers = #tpu.dot_dimension_numbers<[1], [0], [0], [1], [0, 0, 1, 1], [], []>} : vector<16x96xbf16>, vector<96x128xbf16>, vector<16x128xf32> -> vector<16x128xf32>
    %c0_3 = arith.constant 0 : index
    %c0_4 = arith.constant 0 : index
    %3 = vector.load %arg5[%c0_3, %c0_4] : memref<3x128xf32, #tpu.memory_space<vmem>>, vector<1x128xf32>
    %4 = vector.broadcast %3 : vector<1x128xf32> to vector<16x128xf32>
    %5 = arith.addf %2, %4 : vector<16x128xf32>
    %6 = arith.mulf %5, %5 : vector<16x128xf32>
    %cst_5 = arith.constant dense<0.000000e+00> : vector<16xf32>
    %7 = vector.multi_reduction <add>, %6, %cst_5 [1] : vector<16x128xf32> to vector<16xf32>
    %8 = vector.shape_cast %7 : vector<16xf32> to vector<16x1xf32>
    %cst_6 = arith.constant 1.000000e-24 : f32
    %9 = vector.broadcast %cst_6 : f32 to vector<16x1xf32>
    %10 = arith.maximumf %8, %9 : vector<16x1xf32>
    %11 = math.rsqrt %10 : vector<16x1xf32>
    %12 = vector.broadcast %11 : vector<16x1xf32> to vector<16x128xf32>
    %13 = arith.mulf %5, %12 : vector<16x128xf32>
    %c0_7 = arith.constant 0 : index
    %c0_8 = arith.constant 0 : index
    %14 = vector.load %arg0[%c0_7, %c0_8] : memref<8x2xf32, #tpu.memory_space<vmem>>, vector<8x2xf32>
    %cst_9 = arith.constant dense<0.000000e+00> : vector<8xf32>
    %15 = vector.multi_reduction <add>, %14, %cst_9 [1] : vector<8x2xf32> to vector<8xf32>
    %16 = vector.shape_cast %15 : vector<8xf32> to vector<8x1xf32>
    %17 = tpu.reciprocal %16 {approx = true} : vector<8x1xf32> -> vector<8x1xf32>
    %18 = vector.broadcast %17 : vector<8x1xf32> to vector<8x2xf32>
    %19 = arith.mulf %14, %18 : vector<8x2xf32>
    %cst_10 = arith.constant 0.000000e+00 : f32
    %20 = vector.broadcast %cst_10 : f32 to vector<8x128xf32>
    %c0_11 = arith.constant 0 : index
    %c0_12 = arith.constant 0 : index
    %21 = vector.load %arg3[%c0_11, %c0_12] : memref<8x256xbf16, #tpu.memory_space<vmem>>, vector<8x128xbf16>
    %c0_13 = arith.constant 0 : index
    %c0_14 = arith.constant 0 : index
    %22 = vector.load %arg4[%c0_13, %c0_14] : memref<256x128xbf16, #tpu.memory_space<vmem>>, vector<128x128xbf16>
    %cst_15 = arith.constant dense<0.000000e+00> : vector<8x128xf32>
    %23 = tpu.matmul %21, %22, %cst_15 {dimension_numbers = #tpu.dot_dimension_numbers<[1], [0], [0], [1], [0, 0, 1, 1], [], []>} : vector<8x128xbf16>, vector<128x128xbf16>, vector<8x128xf32> -> vector<8x128xf32>
    %c1 = arith.constant 1 : index
    %c0_16 = arith.constant 0 : index
    %24 = vector.load %arg5[%c1, %c0_16] : memref<3x128xf32, #tpu.memory_space<vmem>>, vector<1x128xf32>
    %25 = vector.broadcast %24 : vector<1x128xf32> to vector<8x128xf32>
    %26 = arith.addf %23, %25 : vector<8x128xf32>
    %27 = arith.mulf %26, %26 : vector<8x128xf32>
    %cst_17 = arith.constant dense<0.000000e+00> : vector<8xf32>
    %28 = vector.multi_reduction <add>, %27, %cst_17 [1] : vector<8x128xf32> to vector<8xf32>
    %29 = vector.shape_cast %28 : vector<8xf32> to vector<8x1xf32>
    %cst_18 = arith.constant 1.000000e-24 : f32
    %30 = vector.broadcast %cst_18 : f32 to vector<8x1xf32>
    %31 = arith.maximumf %29, %30 : vector<8x1xf32>
    %32 = math.rsqrt %31 : vector<8x1xf32>
    %33 = vector.broadcast %32 : vector<8x1xf32> to vector<8x128xf32>
    %34 = arith.mulf %26, %33 : vector<8x128xf32>
    %35 = vector.extract_strided_slice %19 {offsets = [0, 0], sizes = [8, 1], strides = [1, 1]} : vector<8x2xf32> to vector<8x1xf32>
    %36 = vector.broadcast %35 : vector<8x1xf32> to vector<8x128xf32>
    %37 = arith.mulf %36, %34 : vector<8x128xf32>
    %38 = arith.addf %20, %37 : vector<8x128xf32>
    %c0_19 = arith.constant 0 : index
    %c128 = arith.constant 128 : index
    %39 = vector.load %arg3[%c0_19, %c128] : memref<8x256xbf16, #tpu.memory_space<vmem>>, vector<8x128xbf16>
    %c128_20 = arith.constant 128 : index
    %c0_21 = arith.constant 0 : index
    %40 = vector.load %arg4[%c128_20, %c0_21] : memref<256x128xbf16, #tpu.memory_space<vmem>>, vector<128x128xbf16>
    %cst_22 = arith.constant dense<0.000000e+00> : vector<8x128xf32>
    %41 = tpu.matmul %39, %40, %cst_22 {dimension_numbers = #tpu.dot_dimension_numbers<[1], [0], [0], [1], [0, 0, 1, 1], [], []>} : vector<8x128xbf16>, vector<128x128xbf16>, vector<8x128xf32> -> vector<8x128xf32>
    %c2 = arith.constant 2 : index
    %c0_23 = arith.constant 0 : index
    %42 = vector.load %arg5[%c2, %c0_23] : memref<3x128xf32, #tpu.memory_space<vmem>>, vector<1x128xf32>
    %43 = vector.broadcast %42 : vector<1x128xf32> to vector<8x128xf32>
    %44 = arith.addf %41, %43 : vector<8x128xf32>
    %45 = arith.mulf %44, %44 : vector<8x128xf32>
    %cst_24 = arith.constant dense<0.000000e+00> : vector<8xf32>
    %46 = vector.multi_reduction <add>, %45, %cst_24 [1] : vector<8x128xf32> to vector<8xf32>
    %47 = vector.shape_cast %46 : vector<8xf32> to vector<8x1xf32>
    %cst_25 = arith.constant 1.000000e-24 : f32
    %48 = vector.broadcast %cst_25 : f32 to vector<8x1xf32>
    %49 = arith.maximumf %47, %48 : vector<8x1xf32>
    %50 = math.rsqrt %49 : vector<8x1xf32>
    %51 = vector.broadcast %50 : vector<8x1xf32> to vector<8x128xf32>
    %52 = arith.mulf %44, %51 : vector<8x128xf32>
    %53 = vector.extract_strided_slice %19 {offsets = [0, 1], sizes = [8, 1], strides = [1, 1]} : vector<8x2xf32> to vector<8x1xf32>
    %54 = vector.broadcast %53 : vector<8x1xf32> to vector<8x128xf32>
    %55 = arith.mulf %54, %52 : vector<8x128xf32>
    %56 = arith.addf %38, %55 : vector<8x128xf32>
    %57 = arith.truncf %13 : vector<16x128xf32> to vector<16x128xbf16>
    %58 = arith.truncf %56 : vector<8x128xf32> to vector<8x128xbf16>
    %cst_26 = arith.constant dense<0.000000e+00> : vector<16x8xf32>
    %59 = tpu.matmul %57, %58, %cst_26 {dimension_numbers = #tpu.dot_dimension_numbers<[1], [1], [0], [0], [0, 0, 1, 0], [], []>} : vector<16x128xbf16>, vector<8x128xbf16>, vector<16x8xf32> -> vector<16x8xf32>
    %c0_27 = arith.constant 0 : index
    %c0_28 = arith.constant 0 : index
    %60 = vector.load %arg6[%c0_27, %c0_28] : memref<16x8xf32, #tpu.memory_space<vmem>>, vector<16x8xf32>
    tpu.vector_store %arg6[%c0_27, %c0_28], %59 {strides = array<i32>} : memref<16x8xf32, #tpu.memory_space<vmem>>, vector<16x8xf32>,
    return
  }
}

</mosaic_0001>

<bundles_post_ra>
// kernel: tpu_custom_call.1
= control target key start
LH: loop header
LB: loop body
LE: loop exit
PB: predicated region body
PF: predicated region fallthrough
CT: control target
= control target key end

     0   :  { %11 = vsyncpa [#allocation3], 0  ;;  %s817_s0 = inlined_call_operand.vmem [shape: f32[8,2], index: 0, kind: input, shape index: {}]   ;;  %s818_s1 = inlined_call_operand.vmem [shape: bf16[16,96], index: 1, kind: input, shape index: {}]   ;;  %s819_s2 = inlined_call_operand.hbm [shape: bf16[96,128], index: 2, kind: input, shape index: {}]   ;;  %s820_s3 = inlined_call_operand.hbm [shape: bf16[8,256], index: 3, kind: input, shape index: {}]   ;;  %s821_s4 = inlined_call_operand.hbm [shape: bf16[256,128], index: 4, kind: input, shape index: {}]   ;;  %s822_s5 = inlined_call_operand.vmem [shape: f32[3,128], index: 5, kind: input, shape index: {}]   ;;  %s823_s6 = inlined_call_operand.vmem [shape: f32[16,8], index: 6, kind: output, shape index: {}]  }
   0x1   :  { %12 = vsyncpa [#allocation5], 0  ;;  %s708_s21 = smov [#allocation4]   ;;  %s709_s23 = smov [#allocation2]  }
   0x2   :  { %s35_s22 = sshll.u32 %s708_s21, 4  ;;  %s22_s24 = sshll.u32 %s709_s23, 4  ;;  %s36_s22 = int_to_ptr.vmem [resolvable:$true] %s35_s22  ;;  %s23_s24 = int_to_ptr.vmem [resolvable:$true] %s22_s24 }
   0x3   :  { %s652_s25 = scalar_lea.vmem %s36_s22, 128  ;;  %p657_p1 = scmp.lt.s32.totalorder %s36_s22, %s36_s22 }
   0x4   :  { %p653_p0 = scmp.ne.s32.totalorder %s36_s22, %s652_s25  ;;  %p658_p2 = scmp.lt.s32.totalorder %s652_s25, %s652_s25 }
   0x6   :  { %p659_p3 = por %p658_p2, %p657_p1 }
   0x8   :  { %p660_p4 = pnand %p659_p3, %p653_p0 }
   0xa   :  { %663 = shalt.err (!%p660_p4)
}
   0xb   :  { %38 = dma.hbm_to_vmem [thread:$0]  %s820_s3, 128, %s36_s22, [#allocation5]  }
   0xc   :  { %s672_s28 = scalar_lea.vmem %s23_s24, 768  ;;  %p677_p6 = scmp.lt.s32.totalorder %s23_s24, %s23_s24 }
   0xd   :  { %p673_p5 = scmp.ne.s32.totalorder %s23_s24, %s672_s28  ;;  %p678_p7 = scmp.lt.s32.totalorder %s672_s28, %s672_s28 }
   0xf   :  { %p679_p8 = por %p678_p7, %p677_p6 }
  0x11   :  { %p680_p9 = pnand %p679_p8, %p673_p5 }
  0x13   :  { %683 = shalt.err (!%p680_p9)
}
  0x14   :  { %s710_s29 = smov 64   ;;  %s711_s30 = smov 4  }
  0x15   :  { %28 = dma.hbm_to_vmem [thread:$0]  %s819_s2, 768, %s23_s24, [#allocation3], %s710_s29, %s710_s29, %s711_s30  }
  0x16   :  { %s712_s9 = smov [#allocation6]  }
  0x17   :  { %s44_s10 = sshll.u32 %s712_s9, 4  ;;  %s45_s10 = int_to_ptr.vmem [resolvable:$true] %s44_s10 }
  0x18   :  { %s692_s11 = scalar_lea.vmem %s45_s10, 2048  ;;  %p697_p11 = scmp.lt.s32.totalorder %s45_s10, %s45_s10 }
  0x19   :  { %p693_p10 = scmp.ne.s32.totalorder %s45_s10, %s692_s11  ;;  %p698_p12 = scmp.lt.s32.totalorder %s692_s11, %s692_s11 }
  0x1b   :  { %p699_p13 = por %p698_p12, %p697_p11 }
  0x1d   :  { %p700_p0 = pnand %p699_p13, %p693_p10 }
  0x1f   :  { %703 = shalt.err (!%p700_p0)
}
  0x20   :  { %50 = dma.hbm_to_vmem [thread:$0]  %s821_s4, 2048, %s45_s10, [#allocation5], %s710_s29, %s710_s29, %s711_s30  }
  0x21   :  { %704 = dma.done.wait [#allocation3], 768  }
  0x22   :  { %705 = vsyncadd [#allocation3], 4294966528 }
  0x23   :  { %706 = dma.done.wait [#allocation5], 2176  }
  0x24   :  { %707 = vsyncadd [#allocation5], 4294965120  ;;  %v713_v0 = vmov 0.0   ;;  %vm714_vm0 = vmmov 0   ;;  %v611_v1 = vld [vmem:[#allocation2 + $0x28] sm:$0xff]   ;;  %v612_v2 = vld [vmem:[#allocation6 + $0x38] sm:$0xff]  }
  0x25   :  { %538 = vmatprep.subr.bf16.mxu0 %v713_v0  ;;  %554 = vmatprep.subr.bf16.mxu1 %v713_v0  ;;  %v613_v3 = vld [vmem:[#allocation2 + $0x20] sm:$0xff]   ;;  %v614_v4 = vld [vmem:[#allocation6 + $0x30] sm:$0xff]   ;;  %v615_v5 = vld [vmem:[#allocation2 + $0x18] sm:$0xff]   ;;  %vm181_vm1 = vcmask 15360   ;;  %vm123_vm2 = vcmask 785408   ;;  %v715_v28 = vmov 0  }
  0x26   :  { %550 = vmatprep.mubr.msk.bf16.mxu0 %vm714_vm0, %v713_v0  ;;  %570 = vmatprep.mubr.msk.bf16.mxu1 %vm714_vm0, %v713_v0  ;;  %v616_v6 = vld [vmem:[#allocation6 + $0x28] sm:$0xff]   ;;  %v617_v7 = vld [vmem:[#allocation2 + $0x10] sm:$0xff]   ;;  %v618_v8 = vld [vmem:[#allocation6 + $0x20] sm:$0xff]   ;;  %v716_v29 = vmov 1   ;;  %vm475_vm3 = vcmask 64512  }
  0x27   :  { %539 = vmatpush3.bf16.msra.mxu0 %v611_v1  ;;  %555 = vmatpush3.bf16.msra.mxu1 %v612_v2  ;;  %v619_v9 = vld [vmem:[#allocation2 + $0x8] sm:$0xff]   ;;  %v620_v10 = vld [vmem:[#allocation6 + $0x18] sm:$0xff]   ;;  %v621_v11 = vld [vmem:[#allocation2] sm:$0xff]  }
  0x28   :  { %540 = vmatprep.subr.bf16.mxu0 %v713_v0  ;;  %556 = vmatprep.subr.bf16.mxu1 %v713_v0  ;;  %v622_v12 = vld [vmem:[#allocation6 + $0x10] sm:$0xff]   ;;  %v623_v13 = vld [vmem:[%s818_s1] sm:$0xff]   ;;  %v625_v14 = vld [vmem:[#allocation6 + $0x78] sm:$0xff]  }
  0x29   :  { %v624_v15 = vld [vmem:[#allocation6 + $0x8] sm:$0xff]   ;;  %v627_v18 = vld [vmem:[#allocation6 + $0x70] sm:$0xff]   ;;  %v626_v19 = vld [vmem:[#allocation6] sm:$0xff]   ;;  %609 = vset.pattern.permute.xlu1 %v715_v28  ;;  %610 = vset.pattern.permute.xlu0 %v716_v29 }
  0x2a   :  { %v784_v16 = vld [vmem:[%s817_s0] sm:$0xff]  ;;  %v187_v21 = vld [vmem:[#allocation4] sm:$0xf]  ;;  %v629_v22 = vld [vmem:[#allocation6 + $0x60] sm:$0xff]  }
  0x2b   :  { %541 = vmatpush3.bf16.msra.mxu0 %v613_v3  ;;  %557 = vmatpush3.bf16.msra.mxu1 %v614_v4  ;;  %v182_v17 = vsel %vm181_vm1, %v784_v16, 0.0  ;;  %v628_v20 = vld [vmem:[#allocation6 + $0x68] sm:$0xff]   ;;  %v630_v23 = vld [vmem:[#allocation6 + $0x58] sm:$0xff]   ;;  %v631_v24 = vld [vmem:[#allocation6 + $0x50] sm:$0xff]  }
  0x2c   :  { %542 = vmatprep.subr.bf16.mxu0 %v713_v0  ;;  %558 = vmatprep.subr.bf16.mxu1 %v713_v0  ;;  %v632_v25 = vld [vmem:[#allocation6 + $0x48] sm:$0xff]   ;;  %v633_v26 = vld [vmem:[#allocation6 + $0x40] sm:$0xff]   ;;  %v310_v27 = vld [vmem:[#allocation4 + $0x4] sm:$0xf] }
  0x2d   :  { %183 = vadd.xlane.f32.xlu0 %v182_v17  ;;  %v484_v30 = vld [vmem:[%s822_s5] ss:$0 sm:$0xff]  ;;  %v493_v38 = vld [vmem:[%s822_s5 + $0x1] ss:$0 sm:$0xff]  ;;  %v502_v47 = vld [vmem:[%s822_s5 + $0x2] ss:$0 sm:$0xff] }
  0x2f   :  { %543 = vmatpush3.bf16.msra.mxu0 %v615_v5  ;;  %559 = vmatpush3.bf16.msra.mxu1 %v616_v6 }
  0x30   :  { %544 = vmatprep.subr.bf16.mxu0 %v713_v0  ;;  %560 = vmatprep.subr.bf16.mxu1 %v713_v0 }
  0x33   :  { %545 = vmatpush3.bf16.msra.mxu0 %v617_v7  ;;  %561 = vmatpush3.bf16.msra.mxu1 %v618_v8 }
  0x34   :  { %546 = vmatprep.subr.bf16.mxu0 %v713_v0  ;;  %562 = vmatprep.subr.bf16.mxu1 %v713_v0 }
  0x37   :  { %547 = vmatpush3.bf16.msra.mxu0 %v619_v9  ;;  %563 = vmatpush3.bf16.msra.mxu1 %v620_v10 }
  0x38   :  { %548 = vmatprep.subr.bf16.mxu0 %v713_v0  ;;  %564 = vmatprep.subr.bf16.mxu1 %v713_v0 }
  0x3b   :  { %549 = vmatpush3.bf16.msra.mxu0 %v621_v11  ;;  %565 = vmatpush3.bf16.msra.mxu1 %v622_v12 }
  0x3c   :  { %574 = vmatprep.subr.bf16.mxu0 %v713_v0  ;;  %566 = vmatprep.subr.bf16.mxu1 %v713_v0 }
  0x3e   :  { %551 = vmatmul.mubr.msk.bf16.vlgmr.msra.gmra.mxu0 %vm123_vm2, %v623_v13 }
  0x3f   :  { %575 = vmatpush3.bf16.msra.mxu0 %v625_v14  ;;  %590 = vmatprep.mubr.msk.bf16.mxu0 %vm714_vm0, %v713_v0 }
  0x40   :  { %567 = vmatpush3.bf16.msra.mxu1 %v624_v15  ;;  %576 = vmatprep.subr.bf16.mxu0 %v713_v0 }
  0x41   :  { %568 = vmatprep.subr.bf16.mxu1 %v713_v0 }
  0x43   :  { %577 = vmatpush3.bf16.msra.mxu0 %v627_v18 }
  0x44   :  { %569 = vmatpush3.bf16.msra.mxu1 %v626_v19  ;;  %578 = vmatprep.subr.bf16.mxu0 %v713_v0 }
  0x45   :  { %594 = vmatprep.subr.bf16.mxu1 %v713_v0 }
  0x47   :  { %571 = vmatmul.mubr.bf16.vlgmr.msra.gmra.mxu1 %v187_v21  ;;  %579 = vmatpush3.bf16.msra.mxu0 %v628_v20 }
  0x48   :  { %580 = vmatprep.subr.bf16.mxu0 %v713_v0  ;;  %596 = vmatprep.mubr.msk.bf16.mxu1 %vm714_vm0, %v713_v0 }
  0x4b   :  { %581 = vmatpush3.bf16.msra.mxu0 %v629_v22 }
  0x4c   :  { %582 = vmatprep.subr.bf16.mxu0 %v713_v0 }
  0x4f   :  { %583 = vmatpush3.bf16.msra.mxu0 %v630_v23 }
  0x50   :  { %584 = vmatprep.subr.bf16.mxu0 %v713_v0 }
  0x53   :  { %585 = vmatpush3.bf16.msra.mxu0 %v631_v24 }
  0x54   :  { %586 = vmatprep.subr.bf16.mxu0 %v713_v0 }
  0x57   :  { %587 = vmatpush3.bf16.msra.mxu0 %v632_v25 }
  0x58   :  { %588 = vmatprep.subr.bf16.mxu0 %v713_v0 }
  0x5b   :  { %589 = vmatpush3.bf16.msra.mxu0 %v633_v26 }
  0x5e   :  { %591 = vmatmul.mubr.bf16.vlgmr.msra.gmra.mxu0 %v310_v27 }
  0xb6   :  { %v184_v46 = vpop.xlane.xlu0 %183 }
  0xb7   :  { %634 = vrcp.f32 %v184_v46 }
  0xc4   :  { %v635_v48 = vpop.eup %634 }
  0xc5   :  { %v186_v52 = vmul.f32 %v635_v48, %v784_v16 }
  0xfe   :  { %v161_v31 = vpop.f32.mrf.mxu0 }
  0xff   :  { %v162_v32 = vadd.f32 %v484_v30, %v161_v31 }
 0x100   :  { %v552_v33 = vpop.f32.mrf.mxu0 }
 0x101   :  { %v168_v34 = vmul.f32 %v162_v32, %v162_v32 }
 0x102   :  { %v164_v35 = vpop.f32.mrf.mxu0 }
 0x103   :  { %v165_v36 = vadd.f32 %v484_v30, %v164_v35  ;;  %170 = vadd.xlane.f32.xlu1 %v168_v34 }
 0x104   :  { %v553_v37 = vpop.f32.mrf.mxu0 }
 0x105   :  { %v169_v39 = vmul.f32 %v165_v36, %v165_v36 }
 0x107   :  { %v291_v40 = vpop.f32.mrf.mxu1  ;;  %172 = vadd.xlane.f32.xlu0 %v169_v39 }
 0x108   :  { %v292_v41 = vadd.f32 %v493_v38, %v291_v40 }
 0x109   :  { %v572_v42 = vpop.f32.mrf.mxu1 }
 0x10a   :  { %v297_v43 = vmul.f32 %v292_v41, %v292_v41 }
 0x10b   :  { %v294_v44 = vpop.f32.mrf.mxu1 }
 0x10c   :  { %298 = vadd.xlane.f32.xlu0 %v297_v43 }
 0x10d   :  { %v573_v45 = vpop.f32.mrf.mxu1 }
 0x11e   :  { %v414_v49 = vpop.f32.mrf.mxu0 }
 0x11f   :  { %v415_v50 = vadd.f32 %v502_v47, %v414_v49 }
 0x120   :  { %v592_v51 = vpop.f32.mrf.mxu0 }
 0x121   :  { %v420_v53 = vmul.f32 %v415_v50, %v415_v50 }
 0x122   :  { %v417_v54 = vpop.f32.mrf.mxu0  ;;  %427 = vperm.xlu0 %610, %v186_v52  }
 0x123   :  { %421 = vadd.xlane.f32.xlu1 %v420_v53 }
 0x124   :  { %v593_v55 = vpop.f32.mrf.mxu0 }
 0x134   :  { %305 = vperm.xlu1 %609, %v186_v52  }
 0x18c   :  { %v171_v58 = vpop.xlane.xlu1 %170 }
 0x18d   :  { %v174_v63 = vmax.f32 %v171_v58, 1e-24 }
 0x190   :  { %v173_v56 = vpop.xlane.xlu0 %172 }
 0x191   :  { %v175_v62 = vmax.f32 %v173_v56, 1e-24 }
 0x195   :  { %v299_v57 = vpop.xlane.xlu0 %298 }
 0x196   :  { %v300_v59 = vmax.f32 %v299_v57, 1e-24 }
 0x198   :  { %636 = vrsqrt.f32 %v300_v59 }
 0x19d   :  { %v428_v3 = vpop.permute.xlu0 %427 }
 0x1a5   :  { %v637_v0 = vpop.eup %636 }
 0x1a6   :  { %v302_v4 = vmul.f32 %v637_v0, %v292_v41 }
 0x1ac   :  { %v422_v60 = vpop.xlane.xlu1 %421 }
 0x1ad   :  { %v423_v61 = vmax.f32 %v422_v60, 1e-24 }
 0x1af   :  { %638 = vrsqrt.f32 %v423_v61 }
 0x1b0   :  { %640 = vrsqrt.f32 %v175_v62  ;;  %v306_v2 = vpop.permute.xlu1 %305 }
 0x1b1   :  { %642 = vrsqrt.f32 %v174_v63  ;;  %v308_v6 = vmul.f32 %v306_v2, %v302_v4 }
 0x1bc   :  { %v639_v1 = vpop.eup %638 }
 0x1bd   :  { %v425_v5 = vmul.f32 %v639_v1, %v415_v50  ;;  %v641_v9 = vpop.eup %640 }
 0x1be   :  { %v643_v11 = vpop.eup %642  ;;  %v179_v12 = vmul.f32 %v641_v9, %v165_v36 }
 0x1bf   :  { %v430_v7 = vmul.f32 %v428_v3, %v425_v5  ;;  %v178_v13 = vmul.f32 %v643_v11, %v162_v32 }
 0x1c1   :  { %v431_v8 = vadd.f32 %v430_v7, %v308_v6  ;;  %v432_v14 = vpack.c.bf16 %v179_v12, %v178_v13 }
 0x1c3   :  { %v433_v10 = vpack.c.bf16 %v431_v8, %v431_v8 }
 0x1c5   :  { %595 = vmatpush3.bf16.xpose.msra.mxu1 %v433_v10 }
 0x1cc   :  { %597 = vmatmul.mubr.bf16.vlgmr.msra.gmra.mxu1 %v432_v14 }
 0x28c   :  { %v468_v15 = vpop.f32.mrf.mxu1 }
 0x28d   :  { %476 = vst.msk [vmem:[%s823_s6] sm:$0xff] %vm475_vm3, %v468_v15 }
 0x28e   :  { %v598_v16 = vpop.f32.mrf.mxu1 }
 0x290   :  { %v471_v17 = vpop.f32.mrf.mxu1 }
 0x291   :  { %477 = vst.msk [vmem:[%s823_s6 + $0x8] sm:$0xff] %vm475_vm3, %v471_v17 }
 0x292   :  { %v599_v18 = vpop.f32.mrf.mxu1 }
 0x293   :  { %482 = vsyncpa [#allocation3], 1 }
 0x294   :  { %483 = vsyncpa [#allocation5], 1 }

</bundles_post_ra>
